<compile_context>
chip_gen: v5e
topology: v5e:2x2
jax: 0.10.0
libtpu: 0.0.40
codegen_flags: <defaults>
</compile_context>

<pallas_src>
import math

import jax
import jax.numpy as jnp
from jax import lax
from jax.experimental import pallas as pl
from jax.experimental.pallas import tpu as pltpu


def _num_embedding_mxu_kernel(x_ref, w_ref, bias_ref, out_ref):
    # x_ref   : (TB, C)    numerical values for this batch tile
    # w_ref   : (C, C*D)   block-diagonal column-embedding matrix (constant)
    # bias_ref: (1, C*D)   bias tiled per column (constant)
    # out_ref : (TB, C*D)  flat, lane-dense output tile
    x = x_ref[...].astype(jnp.float32)
    acc = jnp.dot(x, w_ref[...], preferred_element_type=jnp.float32,
                  precision=lax.Precision.HIGHEST)
    out_ref[...] = (acc + bias_ref[...]).astype(out_ref.dtype)


def _make_bcast_kernel(num_cols, hidden_dim):
    # Fallback for very wide tables (block-diagonal W would cost C*C*D*4 bytes):
    # per-column broadcast-FMA into flat lane-dense slabs of the output.
    def kernel(x_ref, col_ref, bias_ref, out_ref):
        # x_ref: (TB, C); col_ref: (C, D); bias_ref: (1, D); out_ref: (TB, C*D)
        x = x_ref[...].astype(jnp.float32)
        bias = bias_ref[...].astype(jnp.float32)
        for c in range(num_cols):                               # static unroll
            xc = x[:, c:c + 1]                                  # (TB, 1)
            colc = col_ref[c:c + 1, :].astype(jnp.float32)      # (1, D)
            out_ref[:, c * hidden_dim:(c + 1) * hidden_dim] = (
                xc * colc + bias).astype(out_ref.dtype)
    return kernel


def _choose_batch_tile(bs, row_out_bytes, row_x_bytes, const_bytes,
                       target_bytes=8 << 20):
    """Batch tile so the output block is ~8 MiB (per-step pipeline overhead <10% even
    at v7x's 3.2 TB/s HBM), at least 2 grid steps whenever the output exceeds ~4 MiB
    (both v7x TensorCores get work), and all double-buffered blocks stay well inside
    v7x's 64 MiB VMEM."""
    budget = (56 << 20) - 2 * const_bytes - (4 << 20)
    per_row = 2 * (row_out_bytes + row_x_bytes)          # double-buffered in+out rows
    tb_cap = max(1, budget // per_row)
    tb = max(1, min(target_bytes // max(row_out_bytes, 1), tb_cap))
    if bs * row_out_bytes > (4 << 20):
        tb = min(tb, -(-bs // 2))                        # force >= 2 grid steps
    if tb >= bs:
        return bs                                        # tiny problem: one step
    return max(8, (tb // 8) * 8)                         # clean sublane tiling


def transtab_num_embedding(num_col_emb, x_num_ts, num_bias, num_mask=None, *,
                           out_dtype=None, use_mxu=None):
    """num_col_emb: (C, D), x_num_ts: (bs, C), num_bias: (1, 1, D) -> (bs, C, D)."""
    del num_mask  # accepted but unused in the PyTorch forward
    bs, C = x_num_ts.shape
    C2, D = num_col_emb.shape
    assert C2 == C, "num_col_emb / x_num_ts column mismatch"
    N = C * D

    if out_dtype is None:
        # Matches torch: col * x.float() + bias promotes to f32 for f32 parameters.
        out_dtype = jnp.result_type(num_col_emb.dtype, jnp.float32, num_bias.dtype)
    out_itemsize = jnp.dtype(out_dtype).itemsize
    x_itemsize = jnp.dtype(x_num_ts.dtype).itemsize

    if use_mxu is None:
        # Use the MXU formulation unless the block-diagonal W itself gets large.
        use_mxu = (C * N * 4) <= (8 << 20)

    if use_mxu:
        # W[c_in, c_out*D + d] = (c_in == c_out) * num_col_emb[c_out, d]
        w = (jnp.eye(C, dtype=jnp.float32)[:, :, None]
             * num_col_emb.astype(jnp.float32)[None, :, :]).reshape(C, N)
        bias_flat = jnp.tile(num_bias.reshape(1, D).astype(jnp.float32), (1, C))
        const_args = (w, bias_flat)
        const_specs = [
            pl.BlockSpec((C, N), lambda b: (0, 0)),      # W (constant across tiles)
            pl.BlockSpec((1, N), lambda b: (0, 0)),      # bias (constant)
        ]
        kernel = _num_embedding_mxu_kernel
        const_bytes = (C * N + N) * 4
    else:
        col = num_col_emb
        bias2 = num_bias.reshape(1, D)
        const_args = (col, bias2)
        const_specs = [
            pl.BlockSpec((C, D), lambda b: (0, 0)),
            pl.BlockSpec((1, D), lambda b: (0, 0)),
        ]
        kernel = _make_bcast_kernel(C, D)
        const_bytes = (C * D + D) * 4

    TB = _choose_batch_tile(bs, N * out_itemsize, C * x_itemsize, const_bytes)
    grid = (pl.cdiv(bs, TB),)

    # Advisory cost estimate: broadcast-FMA, HBM-write bound.
    bytes_accessed = bs * N * out_itemsize + bs * C * x_itemsize + const_bytes
    cost = pl.CostEstimate(flops=2 * bs * N, transcendentals=0,
                           bytes_accessed=int(bytes_accessed))

    # Double-buffered output + x tiles, plus the (double-buffered) constant blocks.
    # TODO(synk): pipeline_mode=pl.Buffered(1) on the constant W/bias BlockSpecs would
    # drop their second VMEM buffer; only matters for very large C*D, so left default.
    vmem_bytes = (2 * TB * (N * out_itemsize + C * x_itemsize)
                  + 2 * const_bytes + (2 << 20))
    vmem_limit = int(min(max(vmem_bytes, 32 << 20), 60 << 20))

    out_flat = pl.pallas_call(
        kernel,
        out_shape=jax.ShapeDtypeStruct((bs, N), out_dtype),
        grid_spec=pltpu.PrefetchScalarGridSpec(
            num_scalar_prefetch=0,
            grid=grid,
            in_specs=[pl.BlockSpec((TB, C), lambda b: (b, 0))] + const_specs,
            out_specs=pl.BlockSpec((TB, N), lambda b: (b, 0)),
        ),
        compiler_params=pltpu.CompilerParams(
            dimension_semantics=("parallel",),
            vmem_limit_bytes=vmem_limit,
        ),
        cost_estimate=cost,
    )(x_num_ts, *const_args)

    # Layout-only split of the flat lane-dense slab; fuses with the consumer in a full
    # model. The kernel never pads, slices, or re-reads the output.
    return out_flat.reshape(bs, C, D)


def _reference(num_col_emb, x_num_ts, num_bias):
    return (num_col_emb[None, :, :] * x_num_ts[:, :, None].astype(jnp.float32)
            + num_bias)


if __name__ == "__main__":
    key = jax.random.PRNGKey(0)
    k_col, k_x, k_bias = jax.random.split(key, 3)

    # Small shapes consistent with the module; hidden_dim=128 is the real TransTab
    # default and keeps the flat output lane-dense.
    bs, num_cols, hidden_dim = 2, 8, 128
    bound = 1.0 / math.sqrt(hidden_dim)
    num_col_emb = jax.random.normal(k_col, (num_cols, hidden_dim), dtype=jnp.float32)
    x_num_ts = jax.random.normal(k_x, (bs, num_cols), dtype=jnp.float32)
    num_bias = jax.random.uniform(k_bias, (1, 1, hidden_dim), dtype=jnp.float32,
                                  minval=-bound, maxval=bound)
    # TODO(synk): self.norm (LayerNorm) is declared in __init__ but never used in the
    # PyTorch forward, so it is intentionally not applied here.

    out = jax.block_until_ready(transtab_num_embedding(num_col_emb, x_num_ts, num_bias))
    ref = _reference(num_col_emb, x_num_ts, num_bias)
    assert out.shape == (bs, num_cols, hidden_dim)
    assert jnp.allclose(out, ref, atol=1e-5, rtol=1e-5), "mismatch (MXU path)"

    # Exercise the masked-store path: C % 8 != 0, D % 128 != 0, bs % 8 != 0.
    bs2, c2, d2 = 5, 3, 32
    col2 = jax.random.normal(k_col, (c2, d2), dtype=jnp.float32)
    x2 = jax.random.normal(k_x, (bs2, c2), dtype=jnp.float32)
    bias2 = jax.random.uniform(k_bias, (1, 1, d2), dtype=jnp.float32,
                               minval=-1.0 / math.sqrt(d2), maxval=1.0 / math.sqrt(d2))
    out2 = jax.block_until_ready(transtab_num_embedding(col2, x2, bias2))
    ref2 = _reference(col2, x2, bias2)
    assert out2.shape == (bs2, c2, d2)
    assert jnp.allclose(out2, ref2, atol=1e-5, rtol=1e-5), "mismatch (odd shapes)"

    # Exercise the per-column VPU fallback (used automatically for very wide tables).
    out3 = jax.block_until_ready(
        transtab_num_embedding(num_col_emb, x_num_ts, num_bias, use_mxu=False))
    assert jnp.allclose(out3, ref, atol=1e-6), "mismatch (fallback path)"

    print("KERNEL_OK")
</pallas_src>

<mosaic_0001>
module attributes {stable_mosaic.version = 11 : i64} {
  func.func @_num_embedding_mxu_kernel(%arg0: i32, %arg1: memref<2x8xf32, #tpu.memory_space<vmem>>, %arg2: memref<8x1024xf32, #tpu.memory_space<vmem>>, %arg3: memref<1x1024xf32, #tpu.memory_space<vmem>>, %arg4: memref<2x1024xf32, #tpu.memory_space<vmem>>) attributes {dimension_semantics = [#tpu.dimension_semantics<parallel>], iteration_bounds = array<i64: 1>, scalar_prefetch = 0 : i64, scratch_operands = 0 : i64, tpu.core_type = #tpu.core_type<tc>, window_params = [{transform_indices = @transform_0, window_bounds = array<i64: 2, 8>}, {pipeline_mode = #tpu.pipeline_mode<synchronous>, transform_indices = @transform_1, window_bounds = array<i64: 8, 1024>}, {pipeline_mode = #tpu.pipeline_mode<synchronous>, transform_indices = @transform_2, window_bounds = array<i64: 1, 1024>}, {transform_indices = @transform_3, window_bounds = array<i64: 2, 1024>}]} {
    %c0 = arith.constant 0 : index
    %c0_0 = arith.constant 0 : index
    %0 = vector.load %arg1[%c0, %c0_0] : memref<2x8xf32, #tpu.memory_space<vmem>>, vector<2x8xf32>
    %c0_1 = arith.constant 0 : index
    %c0_2 = arith.constant 0 : index
    %1 = vector.load %arg2[%c0_1, %c0_2] : memref<8x1024xf32, #tpu.memory_space<vmem>>, vector<8x1024xf32>
    %cst = arith.constant dense<0.000000e+00> : vector<2x1024xf32>
    %2 = tpu.matmul %0, %1, %cst {dimension_numbers = #tpu.dot_dimension_numbers<[1], [0], [0], [1], [0, 0, 1, 1], [], []>, precision = #tpu.contract_precision<fp32>} : vector<2x8xf32>, vector<8x1024xf32>, vector<2x1024xf32> -> vector<2x1024xf32>
    %c0_3 = arith.constant 0 : index
    %c0_4 = arith.constant 0 : index
    %3 = vector.load %arg3[%c0_3, %c0_4] : memref<1x1024xf32, #tpu.memory_space<vmem>>, vector<1x1024xf32>
    %4 = vector.broadcast %3 : vector<1x1024xf32> to vector<2x1024xf32>
    %5 = arith.addf %2, %4 : vector<2x1024xf32>
    %c0_5 = arith.constant 0 : index
    %c0_6 = arith.constant 0 : index
    %6 = vector.load %arg4[%c0_5, %c0_6] : memref<2x1024xf32, #tpu.memory_space<vmem>>, vector<2x1024xf32>
    tpu.vector_store %arg4[%c0_5, %c0_6], %5 {strides = array<i32>} : memref<2x1024xf32, #tpu.memory_space<vmem>>, vector<2x1024xf32>,
    return
  }
  func.func @transform_0(%arg0: i32) -> (i32, i32) {
    %c0_i32 = arith.constant 0 : i32
    %c0_i32_0 = arith.constant 0 : i32
    return %arg0, %c0_i32 : i32, i32
  }
  func.func @transform_1(%arg0: i32) -> (i32, i32) {
    %c0_i32 = arith.constant 0 : i32
    %c0_i32_0 = arith.constant 0 : i32
    %c0_i32_1 = arith.constant 0 : i32
    return %c0_i32, %c0_i32_0 : i32, i32
  }
  func.func @transform_2(%arg0: i32) -> (i32, i32) {
    %c0_i32 = arith.constant 0 : i32
    %c0_i32_0 = arith.constant 0 : i32
    %c0_i32_1 = arith.constant 0 : i32
    return %c0_i32, %c0_i32_0 : i32, i32
  }
  func.func @transform_3(%arg0: i32) -> (i32, i32) {
    %c0_i32 = arith.constant 0 : i32
    %c0_i32_0 = arith.constant 0 : i32
    return %arg0, %c0_i32 : i32, i32
  }
}

</mosaic_0001>

<bundles_post_ra>
// kernel: tpu_custom_call.1
= control target key start
LH: loop header
LB: loop body
LE: loop exit
PB: predicated region body
PF: predicated region fallthrough
CT: control target
= control target key end

     0   :  { %8 = vsyncpa [#allocation3], 0  ;;  %s1518_s0 = inlined_call_operand.hbm [shape: f32[2,8], index: 0, kind: input, shape index: {}]   ;;  %s1519_s1 = inlined_call_operand.hbm [shape: f32[8,1024], index: 1, kind: input, shape index: {}]   ;;  %s1520_s2 = inlined_call_operand.hbm [shape: f32[1,1024], index: 2, kind: input, shape index: {}]   ;;  %s1521_s3 = inlined_call_operand.hbm [shape: f32[2,1024], index: 3, kind: output, shape index: {}]  }
   0x1   :  { %9 = vsyncpa [#allocation6], 0  ;;  %s27_s14 = sshll.u32 %s1519_s1, 4  ;;  %s28_s14 = int_to_ptr.hbm [resolvable:$true] %s27_s14 }
   0x2   :  { %10 = vsyncpa [#allocation4], 0  ;;  %s1406_s15 = smov [#allocation5]   ;;  %s16_s19 = sshll.u32 %s1518_s0, 4  ;;  %s17_s19 = int_to_ptr.hbm [resolvable:$true] %s16_s19 }
   0x3   :  { %s29_s16 = sshll.u32 %s1406_s15, 4  ;;  %s1407_s20 = smov [#allocation2]   ;;  %s30_s16 = int_to_ptr.vmem [resolvable:$true] %s29_s16 }
   0x4   :  { %32 = dma.hbm_to_vmem [thread:$0]  %s28_s14, 1024, %s30_s16, [#allocation6]  }
   0x5   :  { %s18_s21 = sshll.u32 %s1407_s20, 4  ;;  %s38_s24 = sshll.u32 %s1520_s2, 4  ;;  %s19_s21 = int_to_ptr.vmem [resolvable:$true] %s18_s21  ;;  %s39_s24 = int_to_ptr.hbm [resolvable:$true] %s38_s24 }
   0x6   :  { %21 = dma.hbm_to_vmem [thread:$0]  %s17_s19, 32, %s19_s21, [#allocation3]  }
   0x7   :  { %s1408_s1 = smov [#allocation7]  }
   0x8   :  { %s40_s25 = sshll.u32 %s1408_s1, 4  ;;  %s41_s25 = int_to_ptr.vmem [resolvable:$true] %s40_s25 }
   0x9   :  { %43 = dma.hbm_to_vmem [thread:$0]  %s39_s24, 128, %s41_s25, [#allocation6]  }
   0xa   :  { %1400 = dma.done.wait [#allocation3], 32  }
   0xb   :  { %1401 = vsyncadd [#allocation3], 4294967264 }
   0xc   :  { %1402 = dma.done.wait [#allocation6], 1152  }
   0xd   :  { %1403 = vsyncadd [#allocation6], 4294966144  ;;  %vm83_vm0 = vcmask 64512   ;;  %v57_v0 = vld [vmem:[#allocation5] sm:$0xff]  ;;  %v56_v1 = vld [vmem:[#allocation2] sm:$0x3] }
   0xe   :  { %v58_v2 = vld [vmem:[#allocation5 + $0x8] sm:$0xff]  ;;  %v102_v3 = vand.u32 4294901760, %v57_v0  ;;  %v85_v4 = vsel %vm83_vm0, %v56_v1, 0  ;;  %v59_v6 = vld [vmem:[#allocation5 + $0x10] sm:$0xff]  ;;  %v60_v9 = vld [vmem:[#allocation5 + $0x18] sm:$0xff]  ;;  %vm1269_vm1 = vcmask 1041408  }
   0xf   :  { %v248_v5 = vand.u32 4294901760, %v58_v2  ;;  %v1439_v7 = vand.u32 4294901760, %v85_v4  ;;  %v394_v8 = vand.u32 4294901760, %v59_v6  ;;  %v540_v16 = vand.u32 4294901760, %v60_v9  ;;  %v61_v31 = vld [vmem:[#allocation5 + $0x20] sm:$0xff]  ;;  %v62_v33 = vld [vmem:[#allocation5 + $0x28] sm:$0xff] }
  0x10   :  { %v129_v10 = vsub.f32 %v57_v0, %v102_v3  ;;  %103 = vmatpush.msra.mxu0 %v102_v3  ;;  %179 = vmatpush.msra.mxu3 %v102_v3  ;;  %v686_v32 = vand.u32 4294901760, %v61_v31  ;;  %v832_v35 = vand.u32 4294901760, %v62_v33  ;;  %v63_v43 = vld [vmem:[#allocation5 + $0x30] sm:$0xff]  ;;  %v64_v45 = vld [vmem:[#allocation5 + $0x38] sm:$0xff]  ;;  %vm1271_vm2 = vcmask 1045508   ;;  %s1409_s0 = smov [#allocation8]  }
  0x11   :  { %v275_v11 = vsub.f32 %v58_v2, %v248_v5  ;;  %v1442_v12 = vsub.f32 %v85_v4, %v1439_v7  ;;  %v421_v15 = vsub.f32 %v59_v6, %v394_v8  ;;  %v567_v24 = vsub.f32 %v60_v9, %v540_v16  ;;  %v1499_v2 = vld [vmem:[#allocation7] sm:$0xff]  ;;  %s1287_s2 = sshll.u32 %s1409_s0, 4  ;;  %s1289_s28 = sshll.u32 %s1521_s3, 4  ;;  %s1288_s2 = int_to_ptr.vmem [resolvable:$true] %s1287_s2  ;;  %s1290_s28 = int_to_ptr.hbm [resolvable:$true] %s1289_s28 }
  0x12   :  { %156 = vmatpush.msra.mxu2 %v129_v10  ;;  %v130_v13 = vand.u32 4294901760, %v129_v10  ;;  %v713_v34 = vsub.f32 %v61_v31, %v686_v32  ;;  %v859_v37 = vsub.f32 %v62_v33, %v832_v35  ;;  %v978_v44 = vand.u32 4294901760, %v63_v43 }
  0x13   :  { %v276_v14 = vand.u32 4294901760, %v275_v11  ;;  %159 = vmatmul.f32.vlgmr.msra.gmra.mxu2 %v1442_v12  ;;  %v1446_v17 = vand.u32 4294901760, %v1442_v12  ;;  %v422_v23 = vand.u32 4294901760, %v421_v15  ;;  %v568_v27 = vand.u32 4294901760, %v567_v24 }
  0x14   :  { %249 = vmatpush.msrb.mxu2 %v248_v5  ;;  %205 = vmatpush.msrb.mxu0 %v130_v13  ;;  %v131_v19 = vsub.f32 %v129_v10, %v130_v13  ;;  %v714_v36 = vand.u32 4294901760, %v713_v34  ;;  %v860_v39 = vand.u32 4294901760, %v859_v37  ;;  %v1005_v46 = vsub.f32 %v63_v43, %v978_v44 }
  0x15   :  { %v277_v18 = vsub.f32 %v275_v11, %v276_v14  ;;  %v107_v20 = vsub.f32 %v1442_v12, %v1446_v17  ;;  %183 = vmatmul.f32.vlgmr.msra.gmra.mxu3 %v1446_v17  ;;  %v423_v26 = vsub.f32 %v421_v15, %v422_v23  ;;  %v569_v29 = vsub.f32 %v567_v24, %v568_v27 }
  0x16   :  { %351 = vmatpush.msra.mxu2 %v276_v14  ;;  %v132_v22 = vand.u32 4294901760, %v131_v19  ;;  %v715_v38 = vsub.f32 %v713_v34, %v714_v36  ;;  %v861_v41 = vsub.f32 %v859_v37, %v860_v39  ;;  %v1124_v47 = vand.u32 4294901760, %v64_v45 }
  0x17   :  { %v278_v21 = vand.u32 4294901760, %v277_v18  ;;  %v1451_v25 = vand.u32 4294901760, %v107_v20  ;;  %v424_v28 = vand.u32 4294901760, %v423_v26  ;;  %v570_v30 = vand.u32 4294901760, %v569_v29 }
  0x18   :  { %133 = vmatpush.msra.mxu1 %v132_v22  ;;  %v716_v40 = vand.u32 4294901760, %v715_v38  ;;  %v862_v42 = vand.u32 4294901760, %v861_v41  ;;  %v1006_v48 = vand.u32 4294901760, %v1005_v46  ;;  %v1151_v49 = vsub.f32 %v64_v45, %v1124_v47 }
  0x19   :  { %279 = vmatpush.msrb.mxu3 %v278_v21  ;;  %109 = vmatmul.f32.vlgmr.msra.gmra.mxu0 %v1451_v25  ;;  %v68_v4 = vperm.slane %v1499_v2, 1  ;;  %v67_v9 = vperm.slane %v1499_v2, 0  ;;  %vm1273_vm3 = vcmask 1043456  }
  0x1a   :  { %135 = vmatmul.f32.vlgmr.msra.gmra.mxu1 %v1439_v7  ;;  %302 = vmatpush.msra.mxu0 %v275_v11  ;;  %v1007_v50 = vsub.f32 %v1005_v46, %v1006_v48  ;;  %v1152_v51 = vand.u32 4294901760, %v1151_v49 }
  0x1b   :  { %227 = vmatpush.msrb.mxu1 %v102_v3  ;;  %255 = vmatmul.f32.vlgmr.msrb.gmra.mxu2 %v1451_v25 }
  0x1c   :  { %373 = vmatpush.msra.mxu3 %v248_v5  ;;  %448 = vmatpush.msrb.mxu2 %v421_v15  ;;  %v1008_v52 = vand.u32 4294901760, %v1007_v50  ;;  %v1153_v53 = vsub.f32 %v1151_v49, %v1152_v51 }
  0x1d   :  { %325 = vmatpush.msra.mxu1 %v248_v5  ;;  %281 = vmatmul.f32.vlgmr.msrb.gmra.mxu3 %v1439_v7  ;;  %v69_v5 = vperm.slane %v1499_v2, 2 }
  0x1e   :  { %471 = vmatpush.msrb.mxu3 %v394_v8  ;;  %v1154_v54 = vand.u32 4294901760, %v1153_v53 }
  0x21   :  { %207 = vmatmul.f32.vlgmr.msrb.gmra.mxu0 %v1439_v7 }
  0x22   :  { %229 = vmatmul.f32.vlgmr.msrb.gmra.mxu1 %v1439_v7  ;;  %395 = vmatpush.msrb.mxu0 %v394_v8 }
  0x23   :  { %425 = vmatpush.msrb.mxu1 %v424_v28  ;;  %353 = vmatmul.f32.vlgmr.msra.gmra.mxu2 %v1439_v7 }
  0x24   :  { %541 = vmatpush.msra.mxu2 %v540_v16 }
  0x25   :  { %375 = vmatmul.f32.vlgmr.msra.gmra.mxu3 %v1439_v7 }
  0x26   :  { %571 = vmatpush.msra.mxu3 %v570_v30 }
  0x29   :  { %305 = vmatmul.f32.vlgmr.msra.gmra.mxu0 %v1442_v12 }
  0x2a   :  { %329 = vmatmul.f32.vlgmr.msra.gmra.mxu1 %v1446_v17  ;;  %497 = vmatpush.msra.mxu0 %v422_v23 }
  0x2b   :  { %519 = vmatpush.msra.mxu1 %v394_v8  ;;  %451 = vmatmul.f32.vlgmr.msrb.gmra.mxu2 %v1442_v12 }
  0x2c   :  { %643 = vmatpush.msrb.mxu2 %v568_v27 }
  0x2d   :  { %475 = vmatmul.f32.vlgmr.msrb.gmra.mxu3 %v1446_v17 }
  0x2e   :  { %665 = vmatpush.msrb.mxu3 %v540_v16 }
  0x31   :  { %401 = vmatmul.f32.vlgmr.msrb.gmra.mxu0 %v1451_v25 }
  0x32   :  { %427 = vmatmul.f32.vlgmr.msrb.gmra.mxu1 %v1439_v7  ;;  %594 = vmatpush.msrb.mxu0 %v567_v24 }
  0x33   :  { %617 = vmatpush.msrb.mxu1 %v540_v16  ;;  %547 = vmatmul.f32.vlgmr.msra.gmra.mxu2 %v1451_v25  ;;  %v70_v16 = vperm.slane %v1499_v2, 3 }
  0x34   :  { %740 = vmatpush.msra.mxu2 %v713_v34 }
  0x35   :  { %573 = vmatmul.f32.vlgmr.msra.gmra.mxu3 %v1439_v7 }
  0x36   :  { %763 = vmatpush.msra.mxu3 %v686_v32 }
  0x39   :  { %499 = vmatmul.f32.vlgmr.msra.gmra.mxu0 %v1439_v7 }
  0x3a   :  { %521 = vmatmul.f32.vlgmr.msra.gmra.mxu1 %v1439_v7  ;;  %687 = vmatpush.msra.mxu0 %v686_v32 }
  0x3b   :  { %717 = vmatpush.msra.mxu1 %v716_v40  ;;  %645 = vmatmul.f32.vlgmr.msrb.gmra.mxu2 %v1439_v7 }
  0x3c   :  { %833 = vmatpush.msrb.mxu2 %v832_v35 }
  0x3d   :  { %667 = vmatmul.f32.vlgmr.msrb.gmra.mxu3 %v1439_v7 }
  0x3e   :  { %863 = vmatpush.msrb.mxu3 %v862_v42 }
  0x41   :  { %597 = vmatmul.f32.vlgmr.msrb.gmra.mxu0 %v1442_v12 }
  0x42   :  { %621 = vmatmul.f32.vlgmr.msrb.gmra.mxu1 %v1446_v17  ;;  %789 = vmatpush.msrb.mxu0 %v714_v36 }
  0x43   :  { %811 = vmatpush.msrb.mxu1 %v686_v32  ;;  %743 = vmatmul.f32.vlgmr.msra.gmra.mxu2 %v1442_v12 }
  0x44   :  { %935 = vmatpush.msra.mxu2 %v860_v39 }
  0x45   :  { %767 = vmatmul.f32.vlgmr.msra.gmra.mxu3 %v1446_v17 }
  0x46   :  { %957 = vmatpush.msra.mxu3 %v832_v35 }
  0x49   :  { %693 = vmatmul.f32.vlgmr.msra.gmra.mxu0 %v1451_v25 }
  0x4a   :  { %719 = vmatmul.f32.vlgmr.msra.gmra.mxu1 %v1439_v7  ;;  %886 = vmatpush.msra.mxu0 %v859_v37 }
  0x4b   :  { %909 = vmatpush.msra.mxu1 %v832_v35  ;;  %839 = vmatmul.f32.vlgmr.msrb.gmra.mxu2 %v1451_v25 }
  0x4c   :  { %1032 = vmatpush.msrb.mxu2 %v1005_v46 }
  0x4d   :  { %865 = vmatmul.f32.vlgmr.msrb.gmra.mxu3 %v1439_v7 }
  0x4e   :  { %1055 = vmatpush.msrb.mxu3 %v978_v44 }
  0x51   :  { %791 = vmatmul.f32.vlgmr.msrb.gmra.mxu0 %v1439_v7 }
  0x52   :  { %813 = vmatmul.f32.vlgmr.msrb.gmra.mxu1 %v1439_v7  ;;  %979 = vmatpush.msrb.mxu0 %v978_v44 }
  0x53   :  { %1009 = vmatpush.msrb.mxu1 %v1008_v52  ;;  %937 = vmatmul.f32.vlgmr.msra.gmra.mxu2 %v1439_v7 }
  0x54   :  { %1125 = vmatpush.msra.mxu2 %v1124_v47 }
  0x55   :  { %959 = vmatmul.f32.vlgmr.msra.gmra.mxu3 %v1439_v7 }
  0x56   :  { %1155 = vmatpush.msra.mxu3 %v1154_v54 }
  0x59   :  { %889 = vmatmul.f32.vlgmr.msra.gmra.mxu0 %v1442_v12 }
  0x5a   :  { %913 = vmatmul.f32.vlgmr.msra.gmra.mxu1 %v1446_v17  ;;  %1081 = vmatpush.msra.mxu0 %v1006_v48 }
  0x5b   :  { %1103 = vmatpush.msra.mxu1 %v978_v44  ;;  %1035 = vmatmul.f32.vlgmr.msrb.gmra.mxu2 %v1442_v12 }
  0x5c   :  { %1227 = vmatpush.msrb.mxu2 %v1152_v51 }
  0x5d   :  { %1059 = vmatmul.f32.vlgmr.msrb.gmra.mxu3 %v1446_v17 }
  0x5e   :  { %1249 = vmatpush.msrb.mxu3 %v1124_v47 }
  0x61   :  { %985 = vmatmul.f32.vlgmr.msrb.gmra.mxu0 %v1451_v25 }
  0x62   :  { %1011 = vmatmul.f32.vlgmr.msrb.gmra.mxu1 %v1439_v7  ;;  %1178 = vmatpush.msrb.mxu0 %v1151_v49 }
  0x63   :  { %1201 = vmatpush.msrb.mxu1 %v1124_v47  ;;  %1131 = vmatmul.f32.vlgmr.msra.gmra.mxu2 %v1451_v25 }
  0x65   :  { %1157 = vmatmul.f32.vlgmr.msra.gmra.mxu3 %v1439_v7 }
  0x69   :  { %1083 = vmatmul.f32.vlgmr.msra.gmra.mxu0 %v1439_v7 }
  0x6a   :  { %1105 = vmatmul.f32.vlgmr.msra.gmra.mxu1 %v1439_v7 }
  0x6b   :  { %1229 = vmatmul.f32.vlgmr.msrb.gmra.mxu2 %v1439_v7 }
  0x6d   :  { %1251 = vmatmul.f32.vlgmr.msrb.gmra.mxu3 %v1439_v7 }
  0x71   :  { %1181 = vmatmul.f32.vlgmr.msrb.gmra.mxu0 %v1442_v12 }
  0x72   :  { %1205 = vmatmul.f32.vlgmr.msrb.gmra.mxu1 %v1446_v17 }
  0x96   :  { %v110_v55 = vpop.f32.mrf.mxu0  ;;  %v160_v57 = vpop.f32.mrf.mxu2 }
  0x97   :  { %v136_v56 = vpop.f32.mrf.mxu1  ;;  %v111_v14 = vadd.f32 %v110_v55, %v67_v9 }
  0x98   :  { %v184_v58 = vpop.f32.mrf.mxu3 }
  0x99   :  { %v137_v20 = vadd.f32 %v136_v56, %v111_v14 }
  0x9b   :  { %v161_v26 = vadd.f32 %v160_v57, %v137_v20 }
  0x9d   :  { %v185_v32 = vadd.f32 %v184_v58, %v161_v26 }
  0x9e   :  { %v208_v59 = vpop.f32.mrf.mxu0  ;;  %v256_v61 = vpop.f32.mrf.mxu2 }
  0x9f   :  { %v230_v60 = vpop.f32.mrf.mxu1  ;;  %v257_v6 = vadd.f32 %v256_v61, %v68_v4  ;;  %v209_v39 = vadd.f32 %v208_v59, %v185_v32  ;;  %v71_v4 = vperm.slane %v1499_v2, 4 }
  0xa0   :  { %v282_v62 = vpop.f32.mrf.mxu3 }
  0xa1   :  { %v283_v13 = vadd.f32 %v282_v62, %v257_v6  ;;  %v231_v46 = vadd.f32 %v230_v60, %v209_v39  ;;  %v72_v62 = vperm.slane %v1499_v2, 5 }
  0xa6   :  { %v306_v63 = vpop.f32.mrf.mxu0  ;;  %v354_v1 = vpop.f32.mrf.mxu2 }
  0xa7   :  { %v330_v0 = vpop.f32.mrf.mxu1  ;;  %v307_v17 = vadd.f32 %v306_v63, %v283_v13  ;;  %v73_v63 = vperm.slane %v1499_v2, 6 }
  0xa8   :  { %v376_v3 = vpop.f32.mrf.mxu3 }
  0xa9   :  { %v331_v25 = vadd.f32 %v330_v0, %v307_v17 }
  0xab   :  { %v355_v29 = vadd.f32 %v354_v1, %v331_v25 }
  0xad   :  { %v377_v37 = vadd.f32 %v376_v3, %v355_v29 }
  0xae   :  { %v402_v7 = vpop.f32.mrf.mxu0  ;;  %v452_v11 = vpop.f32.mrf.mxu2 }
  0xaf   :  { %v428_v8 = vpop.f32.mrf.mxu1  ;;  %v403_v10 = vadd.f32 %v402_v7, %v69_v5  ;;  %v1263_v42 = vrot.slane %v377_v37, 6 }
  0xb0   :  { %v476_v12 = vpop.f32.mrf.mxu3 }
  0xb1   :  { %v429_v15 = vadd.f32 %v428_v8, %v403_v10  ;;  %v1270_v51 = vsel %vm1269_vm1, %v231_v46, %v1263_v42 }
  0xb3   :  { %v453_v21 = vadd.f32 %v452_v11, %v429_v15  ;;  %v74_v11 = vperm.slane %v1499_v2, 7 }
  0xb5   :  { %v477_v27 = vadd.f32 %v476_v12, %v453_v21 }
  0xb6   :  { %v500_v18 = vpop.f32.mrf.mxu0  ;;  %v548_v22 = vpop.f32.mrf.mxu2 }
  0xb7   :  { %v522_v19 = vpop.f32.mrf.mxu1  ;;  %v549_v23 = vadd.f32 %v548_v22, %v70_v16  ;;  %v501_v33 = vadd.f32 %v500_v18, %v477_v27 }
  0xb8   :  { %v574_v24 = vpop.f32.mrf.mxu3 }
  0xb9   :  { %v575_v28 = vadd.f32 %v574_v24, %v549_v23  ;;  %v523_v40 = vadd.f32 %v522_v19, %v501_v33 }
  0xbb   :  { %v1264_v47 = vrot.slane %v523_v40, 4 }
  0xbe   :  { %v598_v30 = vpop.f32.mrf.mxu0  ;;  %v646_v35 = vpop.f32.mrf.mxu2 }
  0xbf   :  { %v622_v31 = vpop.f32.mrf.mxu1  ;;  %v599_v34 = vadd.f32 %v598_v30, %v575_v28 }
  0xc0   :  { %v668_v36 = vpop.f32.mrf.mxu3 }
  0xc1   :  { %v623_v38 = vadd.f32 %v622_v31, %v599_v34 }
  0xc3   :  { %v647_v41 = vadd.f32 %v646_v35, %v623_v38 }
  0xc5   :  { %v669_v43 = vadd.f32 %v668_v36, %v647_v41 }
  0xc6   :  { %v694_v44 = vpop.f32.mrf.mxu0  ;;  %v744_v49 = vpop.f32.mrf.mxu2 }
  0xc7   :  { %v720_v45 = vpop.f32.mrf.mxu1  ;;  %v1265_v48 = vrot.slane %v669_v43, 2  ;;  %v695_v9 = vadd.f32 %v694_v44, %v71_v4 }
  0xc8   :  { %v768_v50 = vpop.f32.mrf.mxu3 }
  0xc9   :  { %v1272_v52 = vsel %vm1271_vm2, %v1264_v47, %v1265_v48  ;;  %v721_v15 = vadd.f32 %v720_v45, %v695_v9 }
  0xca   :  { %v1274_v53 = vsel %vm1273_vm3, %v1270_v51, %v1272_v52 }
  0xcb   :  { %1280 = vst [vmem:[#allocation8] sm:$0xff] %v1274_v53  ;;  %v745_v21 = vadd.f32 %v744_v49, %v721_v15 }
  0xcd   :  { %v769_v27 = vadd.f32 %v768_v50, %v745_v21 }
  0xce   :  { %v792_v54 = vpop.f32.mrf.mxu0  ;;  %v840_v56 = vpop.f32.mrf.mxu2 }
  0xcf   :  { %v814_v55 = vpop.f32.mrf.mxu1  ;;  %v841_v0 = vadd.f32 %v840_v56, %v72_v62  ;;  %v793_v33 = vadd.f32 %v792_v54, %v769_v27 }
  0xd0   :  { %v866_v57 = vpop.f32.mrf.mxu3 }
  0xd1   :  { %v867_v8 = vadd.f32 %v866_v57, %v841_v0  ;;  %v815_v38 = vadd.f32 %v814_v55, %v793_v33 }
  0xd6   :  { %v890_v58 = vpop.f32.mrf.mxu0  ;;  %v938_v61 = vpop.f32.mrf.mxu2 }
  0xd7   :  { %v914_v59 = vpop.f32.mrf.mxu1  ;;  %v891_v12 = vadd.f32 %v890_v58, %v867_v8 }
  0xd8   :  { %v960_v60 = vpop.f32.mrf.mxu3 }
  0xd9   :  { %v915_v20 = vadd.f32 %v914_v59, %v891_v12 }
  0xdb   :  { %v939_v24 = vadd.f32 %v938_v61, %v915_v20 }
  0xdd   :  { %v961_v2 = vadd.f32 %v960_v60, %v939_v24 }
  0xde   :  { %v986_v1 = vpop.f32.mrf.mxu0  ;;  %v1036_v6 = vpop.f32.mrf.mxu2 }
  0xdf   :  { %v1012_v3 = vpop.f32.mrf.mxu1  ;;  %v987_v5 = vadd.f32 %v986_v1, %v73_v63  ;;  %v1266_v36 = vrot.slane %v961_v2, 6 }
  0xe0   :  { %v1060_v7 = vpop.f32.mrf.mxu3 }
  0xe1   :  { %v1013_v10 = vadd.f32 %v1012_v3, %v987_v5  ;;  %v1275_v41 = vsel %vm1269_vm1, %v815_v38, %v1266_v36 }
  0xe3   :  { %v1037_v16 = vadd.f32 %v1036_v6, %v1013_v10 }
  0xe5   :  { %v1061_v22 = vadd.f32 %v1060_v7, %v1037_v16 }
  0xe6   :  { %v1084_v13 = vpop.f32.mrf.mxu0  ;;  %v1132_v17 = vpop.f32.mrf.mxu2 }
  0xe7   :  { %v1106_v14 = vpop.f32.mrf.mxu1  ;;  %v1133_v18 = vadd.f32 %v1132_v17, %v74_v11  ;;  %v1085_v28 = vadd.f32 %v1084_v13, %v1061_v22 }
  0xe8   :  { %v1158_v19 = vpop.f32.mrf.mxu3 }
  0xe9   :  { %v1159_v23 = vadd.f32 %v1158_v19, %v1133_v18  ;;  %v1107_v34 = vadd.f32 %v1106_v14, %v1085_v28 }
  0xeb   :  { %v1267_v39 = vrot.slane %v1107_v34, 4 }
  0xee   :  { %v1182_v25 = vpop.f32.mrf.mxu0  ;;  %v1230_v30 = vpop.f32.mrf.mxu2 }
  0xef   :  { %v1206_v26 = vpop.f32.mrf.mxu1  ;;  %v1183_v29 = vadd.f32 %v1182_v25, %v1159_v23 }
  0xf0   :  { %v1252_v32 = vpop.f32.mrf.mxu3 }
  0xf1   :  { %v1207_v31 = vadd.f32 %v1206_v26, %v1183_v29 }
  0xf3   :  { %v1231_v35 = vadd.f32 %v1230_v30, %v1207_v31 }
  0xf5   :  { %v1253_v37 = vadd.f32 %v1252_v32, %v1231_v35 }
  0xf7   :  { %v1268_v40 = vrot.slane %v1253_v37, 2 }
  0xf9   :  { %v1276_v42 = vsel %vm1271_vm2, %v1267_v39, %v1268_v40 }
  0xfa   :  { %v1277_v43 = vsel %vm1273_vm3, %v1275_v41, %v1276_v42 }
  0xfb   :  { %1281 = vst [vmem:[#allocation8 + $0x8] sm:$0xff] %v1277_v43 }
  0xfc   :  { %1292 = dma.vmem_to_hbm [thread:$0]  %s1288_s2, 256, %s1290_s28, [#allocation4]  }
  0xfd   :  { %1404 = dma.done.wait [#allocation4], 256  }
  0xfe   :  { %1405 = vsyncadd [#allocation4], 4294967040 }
  0xff   :  { %1297 = vsyncpa [#allocation3], 1 }
 0x100   :  { %1298 = vsyncpa [#allocation6], 1 }
 0x101   :  { %1299 = vsyncpa [#allocation4], 1 }

</bundles_post_ra>
